<compile_context>
chip_gen: v7x
topology: tpu7x:2x2x1
jax: 0.10.0
libtpu: 0.0.40
codegen_flags: <defaults>
</compile_context>

<pallas_src>
import jax
import jax.numpy as jnp
from jax.experimental import pallas as pl
from jax.experimental.pallas import tpu as pltpu


def _round_up(n, m):
    return ((n + m - 1) // m) * m


def _mlp_kernel(x_ref, w1_ref, b1_ref, w2_ref, b2_ref, w3_ref, b3_ref, o_ref):
    x = x_ref[...]                                    # (TB, D) streamed batch tile

    # ---- layer 1 on the MXU: (H1, D) . (TB, D)^T -> (H1, TB). ---------------
    # Contract over D directly (no HBM transpose of x); batch stays on lanes.
    h1 = jax.lax.dot_general(
        w1_ref[...], x,
        dimension_numbers=(((1,), (1,)), ((), ())),
        preferred_element_type=jnp.float32)
    h1 = jnp.maximum(h1 + b1_ref[...], 0.0)           # ReLU, f32 (H1, TB)

    # ---- layer 2 on the MXU: (H2, H1) @ (H1, TB) -> (H2, TB). ----------------
    h2 = jnp.dot(w2_ref[...], h1.astype(w2_ref.dtype),
                 preferred_element_type=jnp.float32)
    h2 = jnp.maximum(h2 + b2_ref[...], 0.0)           # (H2, TB)

    # ---- layer 3: single output neuron -> VPU multiply + sublane reduce. -----
    out = jnp.sum(w3_ref[...] * h2, axis=0, keepdims=True) + b3_ref[0]
    o_ref[...] = out.astype(o_ref.dtype)              # lane-dense (1, TB) store


def neural_net_forward_pallas(x, params, *, batch_tile=8192,
                              matmul_dtype=jnp.float32):
    """Fused MLP forward. x: (B, D) row-major, exactly like nn.Linear input."""
    w1, b1, w2, b2, w3, b3 = params                   # w1 (D,H1), b1 (1,H1), ...
    B, D = x.shape
    H1 = w1.shape[1]
    H2 = w2.shape[1]

    # Batch tile: multiple of 512 (lane-dense, MXU friendly), large to amortize
    # per-grid-step overhead, capped so the grid keeps >= 2 steps when B allows
    # it (v7x megacore gets both TensorCores busy). VMEM stays small even at
    # TB=8192 (~12 MiB incl. double buffering), so no generation-specific trims.
    b_ceil = _round_up(B, 512)
    TB = _round_up(min(max(batch_tile, 512), b_ceil), 512)
    n_steps = pl.cdiv(b_ceil, TB)
    if b_ceil >= 1024:
        n_steps = max(n_steps, 2)
    TB = _round_up(pl.cdiv(b_ceil, n_steps), 512)
    B_pad = _round_up(B, TB)

    # Wrapper-side plumbing: weights only (resident, tiny). x is NOT transposed;
    # it is only zero row-padded when B is not a tile multiple.
    x_in = x.astype(matmul_dtype)
    if B_pad != B:
        x_in = jnp.pad(x_in, ((0, B_pad - B), (0, 0)))
    w1_t = w1.T.astype(matmul_dtype)                  # (H1, D)  resident
    b1_c = b1.reshape(H1, 1).astype(jnp.float32)
    w2_t = w2.T.astype(matmul_dtype)                  # (H2, H1) resident
    b2_c = b2.reshape(H2, 1).astype(jnp.float32)
    w3_c = w3.reshape(H2, 1).astype(jnp.float32)      # column layout for reduce
    b3_s = b3.reshape(1).astype(jnp.float32)          # scalar -> SMEM

    def resident(shape):                              # same block every step
        return pl.BlockSpec(shape, lambda i: (0,) * len(shape))

    grid = (B_pad // TB,)
    out_t = pl.pallas_call(
        _mlp_kernel,
        out_shape=jax.ShapeDtypeStruct((1, B_pad), jnp.float32),
        grid=grid,
        in_specs=[
            pl.BlockSpec((TB, D), lambda i: (i, 0)),            # x: streamed
            resident((H1, D)),                                  # W1^T
            resident((H1, 1)),                                  # b1
            resident((H2, H1)),                                 # W2^T
            resident((H2, 1)),                                  # b2
            resident((H2, 1)),                                  # W3 column
            pl.BlockSpec(memory_space=pltpu.MemorySpace.SMEM),  # b3 scalar
        ],
        out_specs=pl.BlockSpec((1, TB), lambda i: (0, i)),      # lane-dense out
        compiler_params=pltpu.CompilerParams(
            dimension_semantics=("parallel",),                  # shard batch axis
            vmem_limit_bytes=32 * 1024 * 1024),                 # headroom on v5e
    )(x_in, w1_t, b1_c, w2_t, b2_c, w3_c, b3_s)

    # (1, B_pad) -> trim padding -> (B, 1) to match the PyTorch module.
    return out_t[0, :B].reshape(B, 1)


def _forward_xla(x, params):
    """Plain-XLA path: at tiny batches a pallas_call is pure launch overhead."""
    w1, b1, w2, b2, w3, b3 = params
    h = jnp.maximum(x @ w1 + b1, 0.0)
    h = jnp.maximum(h @ w2 + b2, 0.0)
    return h @ w3 + b3


def neural_net_forward(x, params, *, min_pallas_batch=256, **kw):
    """Dispatch: Pallas kernel for large batches, fused XLA dots otherwise."""
    if x.shape[0] < min_pallas_batch:
        return _forward_xla(x, params)
    return neural_net_forward_pallas(x, params, **kw)


def init_params(key, input_size, hidden_size_1=32, hidden_size_2=16):
    """Deterministic init mimicking nn.Linear default U(-1/sqrt(fan_in), +)."""
    ks = jax.random.split(key, 6)

    def linear(kw, kb, fan_in, fan_out):
        bound = 1.0 / jnp.sqrt(jnp.float32(fan_in))
        w = jax.random.uniform(kw, (fan_in, fan_out), jnp.float32, -bound, bound)
        b = jax.random.uniform(kb, (1, fan_out), jnp.float32, -bound, bound)
        return w, b

    w1, b1 = linear(ks[0], ks[1], input_size, hidden_size_1)
    w2, b2 = linear(ks[2], ks[3], hidden_size_1, hidden_size_2)
    w3, b3 = linear(ks[4], ks[5], hidden_size_2, 1)
    return (w1, b1, w2, b2, w3, b3)


if __name__ == "__main__":
    key = jax.random.PRNGKey(0)
    k_x, k_x2, k_p = jax.random.split(key, 3)

    input_size = 5  # state space (4) + action (1)
    params = init_params(k_p, input_size)

    # Small batch (module-typical shape): exercises the single-tile path.
    x_small = jax.random.normal(k_x, (8, input_size), jnp.float32)
    out_small = jax.block_until_ready(neural_net_forward_pallas(x_small, params))
    ref_small = _forward_xla(x_small, params)
    assert out_small.shape == (8, 1), out_small.shape
    assert jnp.allclose(out_small, ref_small, atol=1e-4, rtol=1e-4), "small-batch mismatch"

    # Non-multiple-of-tile batch: exercises the 2-step grid + padding/trim path.
    x_big = jax.random.normal(k_x2, (1200, input_size), jnp.float32)
    out_big = jax.block_until_ready(neural_net_forward_pallas(x_big, params))
    ref_big = _forward_xla(x_big, params)
    assert out_big.shape == (1200, 1), out_big.shape
    assert jnp.allclose(out_big, ref_big, atol=1e-4, rtol=1e-4), "tiled-batch mismatch"

    print("KERNEL_OK")
</pallas_src>

<mosaic_0001>
module attributes {stable_mosaic.version = 11 : i64} {
  func.func @_mlp_kernel(%arg0: i32, %arg1: memref<512x5xf32, #tpu.memory_space<vmem>>, %arg2: memref<32x5xf32, #tpu.memory_space<vmem>>, %arg3: memref<32x1xf32, #tpu.memory_space<vmem>>, %arg4: memref<16x32xf32, #tpu.memory_space<vmem>>, %arg5: memref<16x1xf32, #tpu.memory_space<vmem>>, %arg6: memref<16x1xf32, #tpu.memory_space<vmem>>, %arg7: memref<1xf32, #tpu.memory_space<smem>>, %arg8: memref<1x512xf32, #tpu.memory_space<vmem>>) attributes {dimension_semantics = [#tpu.dimension_semantics<parallel>], iteration_bounds = array<i64: 1>, scalar_prefetch = 0 : i64, scratch_operands = 0 : i64, tpu.core_type = #tpu.core_type<tc>, window_params = [{transform_indices = @transform_0, window_bounds = array<i64: 512, 5>}, {pipeline_mode = #tpu.pipeline_mode<synchronous>, transform_indices = @transform_1, window_bounds = array<i64: 32, 5>}, {pipeline_mode = #tpu.pipeline_mode<synchronous>, transform_indices = @transform_2, window_bounds = array<i64: 32, 1>}, {pipeline_mode = #tpu.pipeline_mode<synchronous>, transform_indices = @transform_3, window_bounds = array<i64: 16, 32>}, {pipeline_mode = #tpu.pipeline_mode<synchronous>, transform_indices = @transform_4, window_bounds = array<i64: 16, 1>}, {pipeline_mode = #tpu.pipeline_mode<synchronous>, transform_indices = @transform_5, window_bounds = array<i64: 16, 1>}, {transform_indices = @transform_6, window_bounds = array<i64: 1>}, {transform_indices = @transform_7, window_bounds = array<i64: 1, 512>}]} {
    %c0 = arith.constant 0 : index
    %c0_0 = arith.constant 0 : index
    %0 = vector.load %arg1[%c0, %c0_0] : memref<512x5xf32, #tpu.memory_space<vmem>>, vector<512x5xf32>
    %c0_1 = arith.constant 0 : index
    %c0_2 = arith.constant 0 : index
    %1 = vector.load %arg2[%c0_1, %c0_2] : memref<32x5xf32, #tpu.memory_space<vmem>>, vector<32x5xf32>
    %cst = arith.constant dense<0.000000e+00> : vector<32x512xf32>
    %2 = tpu.matmul %1, %0, %cst {dimension_numbers = #tpu.dot_dimension_numbers<[1], [1], [0], [0], [0, 0, 1, 0], [], []>} : vector<32x5xf32>, vector<512x5xf32>, vector<32x512xf32> -> vector<32x512xf32>
    %c0_3 = arith.constant 0 : index
    %c0_4 = arith.constant 0 : index
    %3 = vector.load %arg3[%c0_3, %c0_4] : memref<32x1xf32, #tpu.memory_space<vmem>>, vector<32x1xf32>
    %4 = vector.broadcast %3 : vector<32x1xf32> to vector<32x512xf32>
    %5 = arith.addf %2, %4 : vector<32x512xf32>
    %cst_5 = arith.constant 0.000000e+00 : f32
    %6 = vector.broadcast %cst_5 : f32 to vector<32x512xf32>
    %7 = arith.maximumf %5, %6 : vector<32x512xf32>
    %c0_6 = arith.constant 0 : index
    %c0_7 = arith.constant 0 : index
    %8 = vector.load %arg4[%c0_6, %c0_7] : memref<16x32xf32, #tpu.memory_space<vmem>>, vector<16x32xf32>
    %cst_8 = arith.constant dense<0.000000e+00> : vector<16x512xf32>
    %9 = tpu.matmul %8, %7, %cst_8 {dimension_numbers = #tpu.dot_dimension_numbers<[1], [0], [0], [1], [0, 0, 1, 1], [], []>} : vector<16x32xf32>, vector<32x512xf32>, vector<16x512xf32> -> vector<16x512xf32>
    %c0_9 = arith.constant 0 : index
    %c0_10 = arith.constant 0 : index
    %10 = vector.load %arg5[%c0_9, %c0_10] : memref<16x1xf32, #tpu.memory_space<vmem>>, vector<16x1xf32>
    %11 = vector.broadcast %10 : vector<16x1xf32> to vector<16x512xf32>
    %12 = arith.addf %9, %11 : vector<16x512xf32>
    %cst_11 = arith.constant 0.000000e+00 : f32
    %13 = vector.broadcast %cst_11 : f32 to vector<16x512xf32>
    %14 = arith.maximumf %12, %13 : vector<16x512xf32>
    %c0_12 = arith.constant 0 : index
    %c0_13 = arith.constant 0 : index
    %15 = vector.load %arg6[%c0_12, %c0_13] : memref<16x1xf32, #tpu.memory_space<vmem>>, vector<16x1xf32>
    %16 = vector.broadcast %15 : vector<16x1xf32> to vector<16x512xf32>
    %17 = arith.mulf %16, %14 : vector<16x512xf32>
    %cst_14 = arith.constant dense<0.000000e+00> : vector<512xf32>
    %18 = vector.multi_reduction <add>, %17, %cst_14 [0] : vector<16x512xf32> to vector<512xf32>
    %19 = vector.shape_cast %18 : vector<512xf32> to vector<1x512xf32>
    %c0_15 = arith.constant 0 : index
    %20 = memref.load %arg7[%c0_15] : memref<1xf32, #tpu.memory_space<smem>>
    %21 = vector.broadcast %20 : f32 to vector<1x512xf32>
    %22 = arith.addf %19, %21 : vector<1x512xf32>
    %c0_16 = arith.constant 0 : index
    %c0_17 = arith.constant 0 : index
    %23 = vector.load %arg8[%c0_16, %c0_17] : memref<1x512xf32, #tpu.memory_space<vmem>>, vector<1x512xf32>
    tpu.vector_store %arg8[%c0_16, %c0_17], %22 {strides = array<i32>} : memref<1x512xf32, #tpu.memory_space<vmem>>, vector<1x512xf32>,
    return
  }
  func.func @transform_0(%arg0: i32) -> (i32, i32) {
    %c0_i32 = arith.constant 0 : i32
    %c0_i32_0 = arith.constant 0 : i32
    return %arg0, %c0_i32 : i32, i32
  }
  func.func @transform_1(%arg0: i32) -> (i32, i32) {
    %c0_i32 = arith.constant 0 : i32
    %c0_i32_0 = arith.constant 0 : i32
    %c0_i32_1 = arith.constant 0 : i32
    return %c0_i32, %c0_i32_0 : i32, i32
  }
  func.func @transform_2(%arg0: i32) -> (i32, i32) {
    %c0_i32 = arith.constant 0 : i32
    %c0_i32_0 = arith.constant 0 : i32
    %c0_i32_1 = arith.constant 0 : i32
    return %c0_i32, %c0_i32_0 : i32, i32
  }
  func.func @transform_3(%arg0: i32) -> (i32, i32) {
    %c0_i32 = arith.constant 0 : i32
    %c0_i32_0 = arith.constant 0 : i32
    %c0_i32_1 = arith.constant 0 : i32
    return %c0_i32, %c0_i32_0 : i32, i32
  }
  func.func @transform_4(%arg0: i32) -> (i32, i32) {
    %c0_i32 = arith.constant 0 : i32
    %c0_i32_0 = arith.constant 0 : i32
    %c0_i32_1 = arith.constant 0 : i32
    return %c0_i32, %c0_i32_0 : i32, i32
  }
  func.func @transform_5(%arg0: i32) -> (i32, i32) {
    %c0_i32 = arith.constant 0 : i32
    %c0_i32_0 = arith.constant 0 : i32
    %c0_i32_1 = arith.constant 0 : i32
    return %c0_i32, %c0_i32_0 : i32, i32
  }
  func.func @transform_6(%arg0: i32) -> i32 {
    %c0_i32 = arith.constant 0 : i32
    %c0_i32_0 = arith.constant 0 : i32
    return %c0_i32 : i32
  }
  func.func @transform_7(%arg0: i32) -> (i32, i32) {
    %c0_i32 = arith.constant 0 : i32
    %c0_i32_0 = arith.constant 0 : i32
    return %c0_i32, %arg0 : i32, i32
  }
}

</mosaic_0001>

<bundles_post_ra>
// kernel: tpu_custom_call.1
= control target key start
LH: loop header
LB: loop body
LE: loop exit
PB: predicated region body
PF: predicated region fallthrough
CT: control target
= control target key end

     0   :  { %vm120_vm0 = vcmask 39936   ;;  %v1102_v7 = vmov 0   ;;  %s1491_s0 = inlined_call_operand.vmem [shape: f32[512,5], index: 0, kind: input, shape index: {}]   ;;  %s1492_s1 = inlined_call_operand.vmem [shape: f32[32,5], index: 1, kind: input, shape index: {}]   ;;  %s1493_s2 = inlined_call_operand.vmem [shape: f32[32,1], index: 2, kind: input, shape index: {}]   ;;  %s1494_s3 = inlined_call_operand.vmem [shape: f32[16,32], index: 3, kind: input, shape index: {}]   ;;  %s1495_s4 = inlined_call_operand.vmem [shape: f32[16,1], index: 4, kind: input, shape index: {}]   ;;  %s1496_s5 = inlined_call_operand.vmem [shape: f32[16,1], index: 5, kind: input, shape index: {}]   ;;  %s1497_s6 = inlined_call_operand.<no memory space> [shape: f32[1], index: 6, kind: input, shape index: {}]   ;;  %s1498_s7 = inlined_call_operand.hbm [shape: f32[1,512], index: 7, kind: output, shape index: {}]  }
   0x1   :  { %v44_v0 = vld [vmem:[%s1491_s0 + $0x80] sm:$0xff]  ;;  %v45_v1 = vld [vmem:[%s1491_s0 + $0x88] sm:$0xff]  ;;  %vm1157_vm1 = vmpackc.low %vm120_vm0, %vm120_vm0  ;;  %1076 = vset.pattern.permute.xlu0 %v1102_v7  ;;  %1077 = vset.pattern.permute.xlu1 %v1102_v7 }
   0x2   :  { %v76_v2 = vld [vmem:[%s1491_s0 + $0x180] sm:$0xff]  ;;  %v960_v3 = vpack.c.bf16 %v45_v1, %v44_v0  ;;  %v77_v5 = vld [vmem:[%s1491_s0 + $0x188] sm:$0xff]  ;;  %v46_v14 = vld [vmem:[%s1491_s0 + $0x90] sm:$0xff] }
   0x3   :  { %v28_v6 = vld [vmem:[%s1491_s0] sm:$0xff]  ;;  %v1008_v8 = vpack.c.bf16 %v77_v5, %v76_v2  ;;  %v29_v9 = vld [vmem:[%s1491_s0 + $0x8] sm:$0xff]  ;;  %v47_v15 = vld [vmem:[%s1491_s0 + $0x98] sm:$0xff] }
   0x4   :  { %v60_v10 = vld [vmem:[%s1491_s0 + $0x100] sm:$0xff]  ;;  %v61_v11 = vld [vmem:[%s1491_s0 + $0x108] sm:$0xff]  ;;  %962 = vmatprep.subr.msk.bf16.mxu0 %vm1157_vm1, %v960_v3  ;;  %v963_v12 = vpack.c.bf16 %v29_v9, %v28_v6  ;;  %v78_v16 = vld [vmem:[%s1491_s0 + $0x190] sm:$0xff]  ;;  %v966_v17 = vpack.c.bf16 %v47_v15, %v46_v14 }
   0x5   :  { %v1011_v13 = vpack.c.bf16 %v61_v11, %v60_v10  ;;  %1010 = vmatprep.subr.msk.bf16.mxu1 %vm1157_vm1, %v1008_v8  ;;  %v79_v18 = vld [vmem:[%s1491_s0 + $0x198] sm:$0xff]  ;;  %v30_v20 = vld [vmem:[%s1491_s0 + $0x10] sm:$0xff]  ;;  %v48_v24 = vld [vmem:[%s1491_s0 + $0xa0] sm:$0xff] }
   0x6   :  { %965 = vmatpush3.bf16.xpose.msk.msra.mxu0 %vm1157_vm1, %v963_v12  ;;  %v1014_v19 = vpack.c.bf16 %v79_v18, %v78_v16  ;;  %v31_v21 = vld [vmem:[%s1491_s0 + $0x18] sm:$0xff]  ;;  %v62_v22 = vld [vmem:[%s1491_s0 + $0x110] sm:$0xff]  ;;  %v49_v25 = vld [vmem:[%s1491_s0 + $0xa8] sm:$0xff] }
   0x7   :  { %1013 = vmatpush3.bf16.xpose.msk.msra.mxu1 %vm1157_vm1, %v1011_v13  ;;  %968 = vmatprep.subr.msk.bf16.mxu0 %vm1157_vm1, %v966_v17  ;;  %v63_v23 = vld [vmem:[%s1491_s0 + $0x118] sm:$0xff]  ;;  %v80_v26 = vld [vmem:[%s1491_s0 + $0x1a0] sm:$0xff]  ;;  %v81_v27 = vld [vmem:[%s1491_s0 + $0x1a8] sm:$0xff]  ;;  %v969_v28 = vpack.c.bf16 %v31_v21, %v30_v20  ;;  %v972_v30 = vpack.c.bf16 %v49_v25, %v48_v24 }
   0x8   :  { %1016 = vmatprep.subr.msk.bf16.mxu1 %vm1157_vm1, %v1014_v19  ;;  %v1017_v29 = vpack.c.bf16 %v63_v23, %v62_v22  ;;  %v1020_v31 = vpack.c.bf16 %v81_v27, %v80_v26  ;;  %v32_v32 = vld [vmem:[%s1491_s0 + $0x20] sm:$0xff]  ;;  %v33_v33 = vld [vmem:[%s1491_s0 + $0x28] sm:$0xff]  ;;  %v50_v36 = vld [vmem:[%s1491_s0 + $0xb0] sm:$0xff] }
   0x9   :  { %v64_v34 = vld [vmem:[%s1491_s0 + $0x120] sm:$0xff]  ;;  %v65_v35 = vld [vmem:[%s1491_s0 + $0x128] sm:$0xff]  ;;  %v51_v37 = vld [vmem:[%s1491_s0 + $0xb8] sm:$0xff]  ;;  %v975_v40 = vpack.c.bf16 %v33_v33, %v32_v32 }
   0xa   :  { %v82_v38 = vld [vmem:[%s1491_s0 + $0x1b0] sm:$0xff]  ;;  %v83_v39 = vld [vmem:[%s1491_s0 + $0x1b8] sm:$0xff]  ;;  %v1023_v41 = vpack.c.bf16 %v65_v35, %v64_v34  ;;  %v978_v42 = vpack.c.bf16 %v51_v37, %v50_v36  ;;  %v1275_v48 = vld [vmem:[%s1492_s1] sm:$0xff] }
   0xb   :  { %v1026_v43 = vpack.c.bf16 %v83_v39, %v82_v38  ;;  %v34_v44 = vld [vmem:[%s1491_s0 + $0x30] sm:$0xff]  ;;  %v35_v45 = vld [vmem:[%s1491_s0 + $0x38] sm:$0xff]  ;;  %v52_v49 = vld [vmem:[%s1491_s0 + $0xc0] sm:$0xff]  ;;  %912 = vmatprep.mubr.msk.f32.mxu0 %vm120_vm0, %v1275_v48  ;;  %952 = vmatprep.mubr.msk.f32.mxu1 %vm120_vm0, %v1275_v48 }
   0xc   :  { %v66_v46 = vld [vmem:[%s1491_s0 + $0x130] sm:$0xff]  ;;  %v67_v47 = vld [vmem:[%s1491_s0 + $0x138] sm:$0xff]  ;;  %v53_v50 = vld [vmem:[%s1491_s0 + $0xc8] sm:$0xff]  ;;  %v981_v55 = vpack.c.bf16 %v35_v45, %v34_v44 }
   0xd   :  { %v84_v51 = vld [vmem:[%s1491_s0 + $0x1c0] sm:$0xff]  ;;  %v85_v52 = vld [vmem:[%s1491_s0 + $0x1c8] sm:$0xff]  ;;  %v98_v54 = vld [vmem:[%s1493_s2 + $0x10] sm:$0xff]  ;;  %v1029_v56 = vpack.c.bf16 %v67_v47, %v66_v46 }
   0xe   :  { %971 = vmatpush3.bf16.xpose.msk.msra.mxu0 %vm1157_vm1, %v969_v28  ;;  %v96_v53 = vld [vmem:[%s1493_s2] sm:$0xff]  ;;  %112 = vperm.xlu1 %1077, %v98_v54   ;;  %v97_v57 = vld [vmem:[%s1493_s2 + $0x8] sm:$0xff]  ;;  %v99_v58 = vld [vmem:[%s1493_s2 + $0x18] sm:$0xff] }
   0xf   :  { %1019 = vmatpush3.bf16.xpose.msk.msra.mxu1 %vm1157_vm1, %v1017_v29  ;;  %974 = vmatprep.subr.msk.bf16.mxu0 %vm1157_vm1, %v972_v30 }
  0x10   :  { %1022 = vmatprep.subr.msk.bf16.mxu1 %vm1157_vm1, %v1020_v31  ;;  %102 = vperm.xlu0 %1076, %v96_v53  }
  0x16   :  { %977 = vmatpush3.bf16.xpose.msk.msra.mxu0 %vm1157_vm1, %v975_v40 }
  0x17   :  { %1025 = vmatpush3.bf16.xpose.msk.msra.mxu1 %vm1157_vm1, %v1023_v41  ;;  %980 = vmatprep.subr.msk.bf16.mxu0 %vm1157_vm1, %v978_v42 }
  0x18   :  { %1028 = vmatprep.subr.msk.bf16.mxu1 %vm1157_vm1, %v1026_v43 }
  0x19   :  { %13 = vsyncpa [#allocation4], 0  ;;  %v984_v59 = vpack.c.bf16 %v53_v50, %v52_v49  ;;  %v1032_v60 = vpack.c.bf16 %v85_v52, %v84_v51  ;;  %v36_v61 = vld [vmem:[%s1491_s0 + $0x40] sm:$0xff]  ;;  %107 = vperm.xlu0 %1076, %v97_v57   ;;  %117 = vperm.xlu1 %1077, %v99_v58   ;;  %v37_v62 = vld [vmem:[%s1491_s0 + $0x48] sm:$0xff]  ;;  %v1103_v46 = vmov 0.0   ;;  %vm533_vm2 = vcmask 261120  }
  0x1a   :  { %v521_v63 = vld [vmem:[%s1495_s4] sm:$0xff]  ;;  %v522_v0 = vld [vmem:[%s1495_s4 + $0x8] sm:$0xff]  ;;  %v54_v3 = vld [vmem:[%s1491_s0 + $0xd0] sm:$0xff]  ;;  %v987_v8 = vpack.c.bf16 %v37_v62, %v36_v61  ;;  %s1105_s10 = smov [#allocation3]  }
  0x1b   :  { %v68_v1 = vld [vmem:[%s1491_s0 + $0x140] sm:$0xff]  ;;  %v69_v2 = vld [vmem:[%s1491_s0 + $0x148] sm:$0xff]  ;;  %v55_v5 = vld [vmem:[%s1491_s0 + $0xd8] sm:$0xff]  ;;  %s796_s11 = sshll.u32 %s1105_s10, 4  ;;  %s797_s11 = int_to_ptr.vmem [resolvable:$true] %s796_s11 }
  0x1c   :  { %v86_v6 = vld [vmem:[%s1491_s0 + $0x1d0] sm:$0xff]  ;;  %v87_v7 = vld [vmem:[%s1491_s0 + $0x1d8] sm:$0xff]  ;;  %v1035_v9 = vpack.c.bf16 %v69_v2, %v68_v1  ;;  %v702_v10 = vld [vmem:[%s1496_s5] sm:$0xff]  ;;  %v990_v12 = vpack.c.bf16 %v55_v5, %v54_v3  ;;  %p1083_p1 = scmp.lt.s32.totalorder %s797_s11, %s797_s11 }
  0x1d   :  { %525 = vperm.xlu0 %1076, %v521_v63   ;;  %530 = vperm.xlu1 %1077, %v522_v0   ;;  %v703_v11 = vld [vmem:[%s1496_s5 + $0x8] sm:$0xff]  ;;  %v1038_v13 = vpack.c.bf16 %v87_v7, %v86_v6  ;;  %v38_v14 = vld [vmem:[%s1491_s0 + $0x50] sm:$0xff]  ;;  %v39_v15 = vld [vmem:[%s1491_s0 + $0x58] sm:$0xff] }
  0x1e   :  { %983 = vmatpush3.bf16.xpose.msk.msra.mxu0 %vm1157_vm1, %v981_v55  ;;  %v70_v16 = vld [vmem:[%s1491_s0 + $0x150] sm:$0xff]  ;;  %v71_v17 = vld [vmem:[%s1491_s0 + $0x158] sm:$0xff]  ;;  %v56_v18 = vld [vmem:[%s1491_s0 + $0xe0] sm:$0xff]  ;;  %v993_v22 = vpack.c.bf16 %v39_v15, %v38_v14 }
  0x1f   :  { %1031 = vmatpush3.bf16.xpose.msk.msra.mxu1 %vm1157_vm1, %v1029_v56  ;;  %986 = vmatprep.subr.msk.bf16.mxu0 %vm1157_vm1, %v984_v59  ;;  %v57_v19 = vld [vmem:[%s1491_s0 + $0xe8] sm:$0xff]  ;;  %v88_v20 = vld [vmem:[%s1491_s0 + $0x1e0] sm:$0xff]  ;;  %v1041_v23 = vpack.c.bf16 %v71_v17, %v70_v16  ;;  %v58_v30 = vld [vmem:[%s1491_s0 + $0xf0] sm:$0xff] }
  0x20   :  { %1034 = vmatprep.subr.msk.bf16.mxu1 %vm1157_vm1, %v1032_v60  ;;  %v89_v21 = vld [vmem:[%s1491_s0 + $0x1e8] sm:$0xff]  ;;  %v996_v24 = vpack.c.bf16 %v57_v19, %v56_v18  ;;  %v40_v26 = vld [vmem:[%s1491_s0 + $0x60] sm:$0xff]  ;;  %v59_v31 = vld [vmem:[%s1491_s0 + $0xf8] sm:$0xff] }
  0x21   :  { %706 = vperm.xlu0 %1076, %v702_v10   ;;  %711 = vperm.xlu1 %1077, %v703_v11   ;;  %v1044_v25 = vpack.c.bf16 %v89_v21, %v88_v20  ;;  %v41_v27 = vld [vmem:[%s1491_s0 + $0x68] sm:$0xff]  ;;  %v72_v28 = vld [vmem:[%s1491_s0 + $0x160] sm:$0xff]  ;;  %v90_v32 = vld [vmem:[%s1491_s0 + $0x1f0] sm:$0xff]  ;;  %v1002_v36 = vpack.c.bf16 %v59_v31, %v58_v30 }
  0x22   :  { %v73_v29 = vld [vmem:[%s1491_s0 + $0x168] sm:$0xff]  ;;  %v91_v33 = vld [vmem:[%s1491_s0 + $0x1f8] sm:$0xff]  ;;  %v999_v34 = vpack.c.bf16 %v41_v27, %v40_v26  ;;  %v42_v38 = vld [vmem:[%s1491_s0 + $0x70] sm:$0xff] }
  0x23   :  { %v1047_v35 = vpack.c.bf16 %v73_v29, %v72_v28  ;;  %v1050_v37 = vpack.c.bf16 %v91_v33, %v90_v32  ;;  %v43_v39 = vld [vmem:[%s1491_s0 + $0x78] sm:$0xff]  ;;  %v74_v40 = vld [vmem:[%s1491_s0 + $0x170] sm:$0xff]  ;;  %v93_v44 = vld [vmem:[%s1492_s1 + $0x8] sm:$0xff] }
  0x24   :  { %v75_v41 = vld [vmem:[%s1491_s0 + $0x178] sm:$0xff]  ;;  %v1005_v42 = vpack.c.bf16 %v43_v39, %v42_v38  ;;  %v94_v45 = vld [vmem:[%s1492_s1 + $0x10] sm:$0xff] }
  0x25   :  { %v1053_v43 = vpack.c.bf16 %v75_v41, %v74_v40  ;;  %v95_v4 = vld [vmem:[%s1492_s1 + $0x18] sm:$0xff] }
  0x26   :  { %989 = vmatpush3.bf16.xpose.msk.msra.mxu0 %vm1157_vm1, %v987_v8 }
  0x27   :  { %1037 = vmatpush3.bf16.xpose.msk.msra.mxu1 %vm1157_vm1, %v1035_v9  ;;  %992 = vmatprep.subr.msk.bf16.mxu0 %vm1157_vm1, %v990_v12 }
  0x28   :  { %1040 = vmatprep.subr.msk.bf16.mxu1 %vm1157_vm1, %v1038_v13 }
  0x2e   :  { %995 = vmatpush3.bf16.xpose.msk.msra.mxu0 %vm1157_vm1, %v993_v22 }
  0x2f   :  { %1043 = vmatpush3.bf16.xpose.msk.msra.mxu1 %vm1157_vm1, %v1041_v23  ;;  %998 = vmatprep.subr.msk.bf16.mxu0 %vm1157_vm1, %v996_v24 }
  0x30   :  { %1046 = vmatprep.subr.msk.bf16.mxu1 %vm1157_vm1, %v1044_v25 }
  0x36   :  { %1001 = vmatpush3.bf16.xpose.msk.msra.mxu0 %vm1157_vm1, %v999_v34 }
  0x37   :  { %1049 = vmatpush3.bf16.xpose.msk.msra.mxu1 %vm1157_vm1, %v1047_v35  ;;  %1004 = vmatprep.subr.msk.bf16.mxu0 %vm1157_vm1, %v1002_v36 }
  0x38   :  { %1052 = vmatprep.subr.msk.bf16.mxu1 %vm1157_vm1, %v1050_v37 }
  0x3e   :  { %1007 = vmatpush3.bf16.xpose.msk.msra.mxu0 %vm1157_vm1, %v1005_v42 }
  0x3f   :  { %1055 = vmatpush3.bf16.xpose.msk.msra.mxu1 %vm1157_vm1, %v1053_v43 }
  0x45   :  { %913 = vmatmul.mubr.msk.f32.vlgmr.msra.gmra.mrb[0].mxu0 %vm120_vm0, %v1275_v48 }
  0x46   :  { %953 = vmatmul.mubr.msk.f32.vlgmr.msra.gmra.mrb[0].mxu1 %vm120_vm0, %v1275_v48  ;;  %914 = vmatprep.mubr.msk.f32.mxu0 %vm120_vm0, %v93_v44 }
  0x47   :  { %954 = vmatprep.mubr.msk.f32.mxu1 %vm120_vm0, %v93_v44 }
  0x49   :  { %915 = vmatmul.mubr.msk.f32.gmra.mrb[2].mxu0 %vm120_vm0, %v93_v44 }
  0x4a   :  { %955 = vmatmul.mubr.msk.f32.gmra.mrb[2].mxu1 %vm120_vm0, %v93_v44  ;;  %916 = vmatprep.mubr.msk.f32.mxu0 %vm120_vm0, %v94_v45  ;;  %v519_v44 = vld [vmem:[%s1494_s3] sm:$0xff] }
  0x4b   :  { %956 = vmatprep.mubr.msk.f32.mxu1 %vm120_vm0, %v94_v45 }
  0x4d   :  { %917 = vmatmul.mubr.msk.f32.gmra.mrb[4].mxu0 %vm120_vm0, %v94_v45 }
  0x4e   :  { %957 = vmatmul.mubr.msk.f32.gmra.mrb[4].mxu1 %vm120_vm0, %v94_v45  ;;  %918 = vmatprep.mubr.msk.f32.mxu0 %vm120_vm0, %v95_v4  ;;  %v520_v45 = vld [vmem:[%s1494_s3 + $0x8] sm:$0xff] }
  0x4f   :  { %958 = vmatprep.mubr.msk.f32.mxu1 %vm120_vm0, %v95_v4 }
  0x51   :  { %919 = vmatmul.mubr.msk.f32.gmra.mrb[6].mxu0 %vm120_vm0, %v95_v4 }
  0x52   :  { %959 = vmatmul.mubr.msk.f32.gmra.mrb[6].mxu1 %vm120_vm0, %v95_v4  ;;  %604 = vmatprep.mubr.f32.mxu0 %v1103_v46 }
  0x53   :  { %681 = vmatprep.mubr.f32.mxu1 %v1103_v46 }
  0x8d   :  { %v113_v53 = vpop.permute.xlu1 %112 }
  0x8f   :  { %v103_v47 = vpop.permute.xlu0 %102 }
  0x98   :  { %v108_v52 = vpop.permute.xlu0 %107  ;;  %v118_v19 = vpop.permute.xlu1 %117 }
  0x9c   :  { %v526_v4 = vpop.permute.xlu0 %525 }
 0x118   :  { %v391_v48 = vpop.f32.mrb[0].mxu0 }
 0x119   :  { %v480_v49 = vpop.f32.mrb[0].mxu1  ;;  %v393_v50 = vpop.f32.mrb[1].mxu0  ;;  %v392_v54 = vadd.f32 %v391_v48, %v103_v47 }
 0x11a   :  { %v482_v51 = vpop.f32.mrb[1].mxu1  ;;  %v481_v55 = vadd.f32 %v480_v49, %v103_v47  ;;  %v394_v56 = vadd.f32 %v393_v50, %v103_v47 }
 0x11b   :  { %v483_v57 = vadd.f32 %v482_v51, %v103_v47  ;;  %v503_v2 = vmax.f32 %v392_v54, 0.0 }
 0x11c   :  { %v397_v58 = vpop.f32.mrb[2].mxu0  ;;  %v505_v3 = vmax.f32 %v481_v55, 0.0  ;;  %v504_v7 = vmax.f32 %v394_v56, 0.0 }
 0x11d   :  { %v486_v59 = vpop.f32.mrb[2].mxu1  ;;  %v398_v60 = vadd.f32 %v397_v58, %v108_v52  ;;  %v399_v62 = vpop.f32.mrb[3].mxu0  ;;  %v506_v8 = vmax.f32 %v483_v57, 0.0 }
 0x11e   :  { %v487_v61 = vadd.f32 %v486_v59, %v108_v52  ;;  %v488_v63 = vpop.f32.mrb[3].mxu1  ;;  %v400_v0 = vadd.f32 %v399_v62, %v108_v52 }
 0x11f   :  { %v489_v1 = vadd.f32 %v488_v63, %v108_v52  ;;  %v507_v5 = vmax.f32 %v398_v60, 0.0 }
 0x120   :  { %v509_v6 = vmax.f32 %v487_v61, 0.0  ;;  %v508_v9 = vmax.f32 %v400_v0, 0.0  ;;  %v403_v11 = vpop.f32.mrb[4].mxu0 }
 0x121   :  { %v510_v10 = vmax.f32 %v489_v1, 0.0  ;;  %v492_v12 = vpop.f32.mrb[4].mxu1  ;;  %v1058_v13 = vpack.c.bf16 %v507_v5, %v503_v2  ;;  %v405_v15 = vpop.f32.mrb[5].mxu0  ;;  %v404_v20 = vadd.f32 %v403_v11, %v113_v53 }
 0x122   :  { %v1066_v14 = vpack.c.bf16 %v509_v6, %v505_v3  ;;  %v494_v16 = vpop.f32.mrb[5].mxu1  ;;  %v1056_v17 = vpack.c.bf16 %v508_v9, %v504_v7  ;;  %v493_v21 = vadd.f32 %v492_v12, %v113_v53  ;;  %v406_v22 = vadd.f32 %v405_v15, %v113_v53  ;;  %v707_v6 = vpop.permute.xlu0 %706 }
 0x123   :  { %v1064_v18 = vpack.c.bf16 %v510_v10, %v506_v8  ;;  %v495_v23 = vadd.f32 %v494_v16, %v113_v53  ;;  %v511_v32 = vmax.f32 %v404_v20, 0.0  ;;  %v531_v53 = vpop.permute.xlu1 %530 }
 0x124   :  { %v409_v24 = vpop.f32.mrb[6].mxu0  ;;  %1057 = vmatprep.subr.bf16.mxu0 %v1056_v17  ;;  %v513_v33 = vmax.f32 %v493_v21, 0.0  ;;  %v512_v36 = vmax.f32 %v406_v22, 0.0 }
 0x125   :  { %v498_v25 = vpop.f32.mrb[6].mxu1  ;;  %1065 = vmatprep.subr.bf16.mxu1 %v1064_v18  ;;  %v410_v26 = vadd.f32 %v409_v24, %v118_v19  ;;  %v411_v28 = vpop.f32.mrb[7].mxu0  ;;  %1059 = vmatpush1.bf16.msra.mxu0 %v1058_v13  ;;  %v514_v37 = vmax.f32 %v495_v23, 0.0 }
 0x126   :  { %v499_v27 = vadd.f32 %v498_v25, %v118_v19  ;;  %v500_v29 = vpop.f32.mrb[7].mxu1  ;;  %1067 = vmatpush1.bf16.msra.mxu1 %v1066_v14  ;;  %v412_v30 = vadd.f32 %v411_v28, %v118_v19 }
 0x127   :  { %v501_v31 = vadd.f32 %v500_v29, %v118_v19  ;;  %v515_v34 = vmax.f32 %v410_v26, 0.0  ;;  %v712_v7 = vpop.permute.xlu1 %711 }
 0x128   :  { %v517_v35 = vmax.f32 %v499_v27, 0.0  ;;  %v516_v38 = vmax.f32 %v412_v30, 0.0 }
 0x129   :  { %v518_v39 = vmax.f32 %v501_v31, 0.0  ;;  %v1062_v40 = vpack.c.bf16 %v515_v34, %v511_v32  ;;  %v1104_v34 = vmov 1966171168  }
 0x12a   :  { %v1070_v41 = vpack.c.bf16 %v517_v35, %v513_v33  ;;  %v1060_v42 = vpack.c.bf16 %v516_v38, %v512_v36  ;;  %v763_v35 = vunpack.c.l.s4 %v1104_v34  ;;  %v765_v36 = vlaneseq }
 0x12b   :  { %v1068_v43 = vpack.c.bf16 %v518_v39, %v514_v37 }
 0x12c   :  { %1061 = vmatprep.subr.bf16.mxu0 %v1060_v42  ;;  %vm787_vm3 = vcmp.lt.s32.totalorder %v765_v36, 512 }
 0x12d   :  { %1069 = vmatprep.subr.bf16.mxu1 %v1068_v43  ;;  %1063 = vmatpush1.bf16.msra.mxu0 %v1062_v40  ;;  %v751_v43 = vstv %s1497_s6  ;;  %s1078_s6 = scalar_lea.vmem %s797_s11, 64 }
 0x12e   :  { %1071 = vmatpush1.bf16.msra.mxu1 %v1070_v41  ;;  %p1079_p0 = scmp.ne.s32.totalorder %s797_s11, %s1078_s6  ;;  %p1084_p2 = scmp.lt.s32.totalorder %s1078_s6, %s1078_s6 }
 0x130   :  { %876 = vmatmul.mubr.msk.f32.vlgmr.msra.gmra.mrb[8].mxu0 %vm533_vm2, %v519_v44  ;;  %p1085_p3 = por %p1084_p2, %p1083_p1 }
 0x131   :  { %878 = vmatmul.mubr.msk.f32.vlgmr.msra.gmra.mrb[8].mxu1 %vm533_vm2, %v519_v44  ;;  %610 = vmatprep.mubr.f32.mxu0 %v1103_v46 }
 0x132   :  { %687 = vmatprep.mubr.f32.mxu1 %v1103_v46  ;;  %p1086_p4 = pnand %p1085_p3, %p1079_p0 }
 0x134   :  { %877 = vmatmul.mubr.msk.f32.gmra.mrb[10].mxu0 %vm533_vm2, %v520_v45 }
 0x135   :  { %879 = vmatmul.mubr.msk.f32.gmra.mrb[10].mxu1 %vm533_vm2, %v520_v45 }
 0x203   :  { %v606_v47 = vpop.f32.mrb[8].mxu0 }
 0x204   :  { %v683_v48 = vpop.f32.mrb[8].mxu1  ;;  %v607_v49 = vadd.f32 %v606_v47, %v526_v4  ;;  %v608_v51 = vpop.f32.mrb[9].mxu0  ;;  %v766_v47 = vshrl.u32 %v765_v36, 7 }
 0x205   :  { %v684_v50 = vadd.f32 %v683_v48, %v526_v4  ;;  %v685_v52 = vpop.f32.mrb[9].mxu1  ;;  %v609_v54 = vadd.f32 %v608_v51, %v526_v4 }
 0x206   :  { %v686_v55 = vadd.f32 %v685_v52, %v526_v4  ;;  %v694_v58 = vmax.f32 %v607_v49, 0.0  ;;  %v764_v4 = vunpack.c.0.s8 %v763_v35 }
 0x207   :  { %v612_v56 = vpop.f32.mrb[10].mxu0  ;;  %v696_v46 = vmax.f32 %v684_v50, 0.0  ;;  %v695_v63 = vmax.f32 %v609_v54, 0.0 }
 0x208   :  { %v689_v57 = vpop.f32.mrb[10].mxu1  ;;  %v613_v59 = vadd.f32 %v612_v56, %v531_v53  ;;  %v614_v61 = vpop.f32.mrb[11].mxu0  ;;  %v697_v0 = vmax.f32 %v686_v55, 0.0  ;;  %v714_v10 = vmul.f32 %v707_v6, %v694_v58  ;;  %v767_v56 = vsub.s32 %v764_v4, %v766_v47 }
 0x209   :  { %v690_v60 = vadd.f32 %v689_v57, %v531_v53  ;;  %v691_v62 = vpop.f32.mrb[11].mxu1  ;;  %v615_v1 = vadd.f32 %v614_v61, %v531_v53  ;;  %v716_v11 = vmul.f32 %v707_v6, %v696_v46  ;;  %v715_v14 = vmul.f32 %v707_v6, %v695_v63 }
 0x20a   :  { %v692_v2 = vadd.f32 %v691_v62, %v531_v53  ;;  %v698_v3 = vmax.f32 %v613_v59, 0.0  ;;  %v717_v15 = vmul.f32 %v707_v6, %v697_v0 }
 0x20b   :  { %v700_v5 = vmax.f32 %v690_v60, 0.0  ;;  %v699_v8 = vmax.f32 %v615_v1, 0.0 }
 0x20c   :  { %v701_v9 = vmax.f32 %v692_v2, 0.0  ;;  %v718_v12 = vmul.f32 %v712_v7, %v698_v3 }
 0x20d   :  { %v720_v13 = vmul.f32 %v712_v7, %v700_v5  ;;  %v719_v16 = vmul.f32 %v712_v7, %v699_v8 }
 0x20e   :  { %v721_v17 = vmul.f32 %v712_v7, %v701_v9  ;;  %v722_v18 = vadd.f32 %v718_v12, %v714_v10 }
 0x20f   :  { %v736_v19 = vadd.f32 %v720_v13, %v716_v11  ;;  %v729_v20 = vadd.f32 %v719_v16, %v715_v14 }
 0x210   :  { %v743_v21 = vadd.f32 %v721_v17, %v717_v15  ;;  %v723_v22 = vrot.slane %v722_v18, 4 }
 0x211   :  { %v737_v23 = vrot.slane %v736_v19, 4  ;;  %v730_v24 = vrot.slane %v729_v20, 4 }
 0x212   :  { %v744_v25 = vrot.slane %v743_v21, 4  ;;  %v724_v26 = vadd.f32 %v723_v22, %v722_v18 }
 0x213   :  { %v738_v27 = vadd.f32 %v737_v23, %v736_v19  ;;  %v731_v28 = vadd.f32 %v730_v24, %v729_v20 }
 0x214   :  { %v745_v29 = vadd.f32 %v744_v25, %v743_v21  ;;  %v725_v30 = vrot.slane %v724_v26, 2 }
 0x215   :  { %v739_v31 = vrot.slane %v738_v27, 2  ;;  %v732_v32 = vrot.slane %v731_v28, 2 }
 0x216   :  { %v746_v33 = vrot.slane %v745_v29, 2  ;;  %v726_v37 = vadd.f32 %v725_v30, %v724_v26 }
 0x217   :  { %v740_v38 = vadd.f32 %v739_v31, %v738_v27  ;;  %v733_v39 = vadd.f32 %v732_v32, %v731_v28 }
 0x218   :  { %v747_v40 = vadd.f32 %v746_v33, %v745_v29  ;;  %v727_v41 = vrot.slane %v726_v37, 1 }
 0x219   :  { %v741_v42 = vrot.slane %v740_v38, 1  ;;  %v734_v44 = vrot.slane %v733_v39, 1 }
 0x21a   :  { %v748_v45 = vrot.slane %v747_v40, 1  ;;  %v728_v48 = vadd.f32 %v727_v41, %v726_v37 }
 0x21b   :  { %v742_v49 = vadd.f32 %v741_v42, %v740_v38  ;;  %v735_v50 = vadd.f32 %v734_v44, %v733_v39 }
 0x21c   :  { %v749_v51 = vadd.f32 %v748_v45, %v747_v40  ;;  %v752_v52 = vadd.f32 %v751_v43, %v728_v48 }
 0x21d   :  { %v754_v53 = vadd.f32 %v751_v43, %v742_v49  ;;  %v753_v54 = vadd.f32 %v751_v43, %v735_v50 }
 0x21e   :  { %v755_v55 = vadd.f32 %v751_v43, %v749_v51 }
 0x21f   :  { %v760_v57 = vcombine.low %v752_v52, %v753_v54 }
 0x220   :  { %v761_v58 = vcombine.low %v754_v53, %v755_v55 }
 0x221   :  { %v768_v46 = vrot.slane %v760_v57, %v767_v56 }
 0x222   :  { %v775_v59 = vrot.slane %v761_v58, %v767_v56 }
 0x224   :  { %v776_v60 = vcombine.low %v768_v46, %v775_v59 }
 0x226   :  { %v783_v61 = vrot.slane %v776_v60, %v767_v56 }
 0x228   :  { %789 = vst.msk [vmem:[#allocation3] sm:$0xf] %vm787_vm3, %v783_v61 }
 0x229   :  { %1089 = shalt.err (!%p1086_p4)
}
 0x22a   :  { %s1090_s14 = scalar_lea.hbm %s1498_s7, 64 }
 0x22b   :  { %p1091_p5 = scmp.ne.s32.totalorder %s1498_s7, %s1090_s14  ;;  %p1094_p6 = scmp.lt.u32.totalorder %s1090_s14, %s1498_s7 }
 0x22d   :  { %p1096_p7 = pnand %p1094_p6, %p1091_p5 }
 0x22f   :  { %1099 = shalt.err (!%p1096_p7)
}
 0x230   :  { %799 = dma.vmem_to_hbm [thread:$0]  %s797_s11, 64, %s1498_s7, [#allocation4]  }
 0x231   :  { %1100 = dma.done.wait [#allocation4], 64  }
 0x232   :  { %1101 = vsyncadd [#allocation4], 4294967232 }
 0x233   :  { %803 = vsyncpa [#allocation4], 1 }

</bundles_post_ra>
